<compile_context>
chip_gen: v7x
topology: tpu7x:2x2x1
jax: 0.10.0
libtpu: 0.0.40
codegen_flags: <defaults>
</compile_context>

<pallas_src>
import jax
import jax.numpy as jnp
from jax import lax
from jax.experimental import pallas as pl
from jax.experimental.pallas import tpu as pltpu


def _round_up(n, m):
    return ((n + m - 1) // m) * m


def cluster_embedding_kernel(
    xt_ref,                      # (D_in, TM) bf16   (batch on lanes)
    w1t_ref, b1_ref,             # (128, D_in) bf16, (128, 1) f32
    w2t_ref, b2_ref,             # (64, 128)  bf16, (64, 1) f32   (BN1 folded in)
    w3t_ref, b3_ref,             # (E, 64)    bf16, (E, 1) f32    (BN2 folded in)
    outt_ref,                    # (E, TM)    f32
):
    xt = xt_ref[...]

    # Layer 1: Linear -> LeakyReLU. f32 accumulation; elementwise kept in f32 so
    # the same kernel is correct/fast on v5e (no bf16 VPU there).
    h = jnp.dot(w1t_ref[...], xt, preferred_element_type=jnp.float32) + b1_ref[...]
    h = jnp.maximum(h, 0.1 * h)

    # Layer 2: (BN1-folded) Linear -> LeakyReLU
    h = jnp.dot(w2t_ref[...], h.astype(jnp.bfloat16),
                preferred_element_type=jnp.float32) + b2_ref[...]
    h = jnp.maximum(h, 0.1 * h)

    # Layer 3: (BN2-folded) Linear
    z = jnp.dot(w3t_ref[...], h.astype(jnp.bfloat16),
                preferred_element_type=jnp.float32) + b3_ref[...]

    # L2-normalize each batch column (feature axis lives on sublanes).
    # No eps, matching torch `x / x.norm()`; rsqrt runs on the EUP slot and the
    # multiply replaces a divide.
    inv_norm = lax.rsqrt(jnp.sum(z * z, axis=0, keepdims=True))
    outt_ref[...] = z * inv_norm


def fold_params(params):
    """Fold eval-mode BN affines into the following Linear, transpose weights
    for the (features, batch) dataflow, cast to bf16.  Call once and reuse —
    the folded weights are static at inference time."""
    s1, t1 = params["s1"], params["t1"]
    s2, t2 = params["s2"], params["t2"]
    w2 = params["w2"] * s1.reshape(-1, 1)          # diag(s1) @ w2
    b2 = params["b2"] + t1 @ params["w2"]
    w3 = params["w3"] * s2.reshape(-1, 1)          # diag(s2) @ w3
    b3 = params["b3"] + t2 @ params["w3"]
    bf16, f32 = jnp.bfloat16, jnp.float32
    return (
        params["w1"].T.astype(bf16), params["b1"].reshape(-1, 1).astype(f32),
        w2.T.astype(bf16),           b2.reshape(-1, 1).astype(f32),
        w3.T.astype(bf16),           b3.reshape(-1, 1).astype(f32),
    )


def _choose_tile(B, tm_cap):
    """Batch tile = lane dimension of every block.

    Small B: single full-extent step (block last dim == array dim, always legal).
    Large B: multiple of 128 (unmasked stores, dense DMA), sized so the grid has
    >= ~4 steps (the 'parallel' batch axis is what shards across v7x's 2 TCs),
    capped for VMEM headroom."""
    if B <= 512:
        return B
    tm = _round_up(pl.cdiv(B, 4), 128)
    return max(128, min(tm, tm_cap))


def cluster_embedding_forward(x, folded_params, *, tm_cap=8192):
    B, D_in = x.shape
    w1t, b1, w2t, b2, w3t, b3 = folded_params
    E = w3t.shape[0]

    TM = _choose_tile(B, tm_cap)
    grid = (pl.cdiv(B, TM),)

    # One fused wrapper pass: transpose + bf16 cast -> lane-dense input slab.
    xt = x.T.astype(jnp.bfloat16)

    # Weights get a constant index_map so Pallas DMAs them once and keeps them
    # resident in VMEM across grid steps; x^T / out^T are streamed per step.
    def const_spec(a):
        return pl.BlockSpec(a.shape, lambda i: (0,) * a.ndim)

    flops = 2 * B * (D_in * 128 + 128 * 64 + 64 * E)
    bytes_accessed = (
        B * D_in * 2 + B * E * 4
        + w1t.size * 2 + w2t.size * 2 + w3t.size * 2
        + b1.size * 4 + b2.size * 4 + b3.size * 4
    )

    out_t = pl.pallas_call(
        cluster_embedding_kernel,
        out_shape=jax.ShapeDtypeStruct((E, B), jnp.float32),
        grid=grid,
        in_specs=[
            pl.BlockSpec((D_in, TM), lambda i: (0, i)),
            const_spec(w1t), const_spec(b1),
            const_spec(w2t), const_spec(b2),
            const_spec(w3t), const_spec(b3),
        ],
        out_specs=pl.BlockSpec((E, TM), lambda i: (0, i)),
        compiler_params=pltpu.CompilerParams(
            dimension_semantics=("parallel",),
            # Large TM would silently blow v5e's 16 MiB default scoped VMEM;
            # 48 MiB fits all generations (v7x physical VMEM is 64 MiB/TC).
            vmem_limit_bytes=48 * 1024 * 1024,
        ),
        cost_estimate=pl.CostEstimate(
            flops=flops, transcendentals=B, bytes_accessed=bytes_accessed),
    )(xt, w1t, b1, w2t, b2, w3t, b3)

    # (E, B) -> (B, E): tiny epilogue transpose (E = 5 rows), negligible traffic.
    return out_t.T


def init_params(key, input_dim, embedding_dim, num_clusters):
    ks = jax.random.split(key, 7)
    eps = 1e-5

    def linear_init(kw, kb, fan_in, fan_out):
        bound = 1.0 / jnp.sqrt(fan_in)
        w = jax.random.uniform(kw, (fan_in, fan_out), jnp.float32, -bound, bound)
        b = jax.random.uniform(kb, (1, fan_out), jnp.float32, -bound, bound)
        return w, b

    w1, b1 = linear_init(ks[0], ks[1], input_dim, 128)
    w2, b2 = linear_init(ks[2], ks[3], 128, 64)
    w3, b3 = linear_init(ks[4], ks[5], 64, embedding_dim)

    # BatchNorm1d eval-mode affine: gamma=1, beta=0, running_mean=0, running_var=1
    def bn_fold(num_features):
        gamma = jnp.ones((1, num_features), jnp.float32)
        beta = jnp.zeros((1, num_features), jnp.float32)
        running_mean = jnp.zeros((1, num_features), jnp.float32)
        running_var = jnp.ones((1, num_features), jnp.float32)
        scale = gamma / jnp.sqrt(running_var + eps)
        shift = beta - running_mean * scale
        return scale, shift

    s1, t1 = bn_fold(128)
    s2, t2 = bn_fold(64)

    # cluster_centers is a module parameter but unused in forward()
    cluster_centers = jax.random.normal(ks[6], (num_clusters, embedding_dim), jnp.float32)

    return {
        "w1": w1, "b1": b1, "s1": s1, "t1": t1,
        "w2": w2, "b2": b2, "s2": s2, "t2": t2,
        "w3": w3, "b3": b3,
        "cluster_centers": cluster_centers,
    }


def reference_forward(x, p):
    h = x @ p["w1"] + p["b1"]
    h = jnp.where(h > 0, h, 0.1 * h)
    h = h * p["s1"] + p["t1"]
    h = h @ p["w2"] + p["b2"]
    h = jnp.where(h > 0, h, 0.1 * h)
    h = h * p["s2"] + p["t2"]
    z = h @ p["w3"] + p["b3"]
    return z / jnp.linalg.norm(z, axis=1, keepdims=True)


if __name__ == "__main__":
    input_dim = 32
    embedding_dim = 5
    num_clusters = 4
    batch = 8

    key = jax.random.PRNGKey(0)
    k_params, k_x = jax.random.split(key)
    params = init_params(k_params, input_dim, embedding_dim, num_clusters)
    x = jax.random.normal(k_x, (batch, input_dim), jnp.float32)

    folded = fold_params(params)          # fold/cast once, reuse across calls
    out = cluster_embedding_forward(x, folded)
    out = jax.block_until_ready(out)

    ref = reference_forward(x, params)
    assert out.shape == (batch, embedding_dim)
    # bf16 operands (f32 accumulation) -> relaxed tolerance vs. the f32 reference.
    max_err = jnp.max(jnp.abs(out - ref))
    assert jnp.allclose(out, ref, atol=2e-2, rtol=2e-2), f"max abs err {max_err}"
    print("KERNEL_OK")
</pallas_src>

<mosaic_0001>
module attributes {stable_mosaic.version = 11 : i64} {
  func.func @cluster_embedding_kernel(%arg0: i32, %arg1: memref<32x8xbf16, #tpu.memory_space<vmem>>, %arg2: memref<128x32xbf16, #tpu.memory_space<vmem>>, %arg3: memref<128x1xf32, #tpu.memory_space<vmem>>, %arg4: memref<64x128xbf16, #tpu.memory_space<vmem>>, %arg5: memref<64x1xf32, #tpu.memory_space<vmem>>, %arg6: memref<5x64xbf16, #tpu.memory_space<vmem>>, %arg7: memref<5x1xf32, #tpu.memory_space<vmem>>, %arg8: memref<5x8xf32, #tpu.memory_space<vmem>>) attributes {dimension_semantics = [#tpu.dimension_semantics<parallel>], iteration_bounds = array<i64: 1>, scalar_prefetch = 0 : i64, scratch_operands = 0 : i64, tpu.core_type = #tpu.core_type<tc>, window_params = [{transform_indices = @transform_0, window_bounds = array<i64: 32, 8>}, {pipeline_mode = #tpu.pipeline_mode<synchronous>, transform_indices = @transform_1, window_bounds = array<i64: 128, 32>}, {pipeline_mode = #tpu.pipeline_mode<synchronous>, transform_indices = @transform_2, window_bounds = array<i64: 128, 1>}, {pipeline_mode = #tpu.pipeline_mode<synchronous>, transform_indices = @transform_3, window_bounds = array<i64: 64, 128>}, {pipeline_mode = #tpu.pipeline_mode<synchronous>, transform_indices = @transform_4, window_bounds = array<i64: 64, 1>}, {pipeline_mode = #tpu.pipeline_mode<synchronous>, transform_indices = @transform_5, window_bounds = array<i64: 5, 64>}, {pipeline_mode = #tpu.pipeline_mode<synchronous>, transform_indices = @transform_6, window_bounds = array<i64: 5, 1>}, {transform_indices = @transform_7, window_bounds = array<i64: 5, 8>}]} {
    %c0 = arith.constant 0 : index
    %c0_0 = arith.constant 0 : index
    %0 = vector.load %arg1[%c0, %c0_0] : memref<32x8xbf16, #tpu.memory_space<vmem>>, vector<32x8xbf16>
    %c0_1 = arith.constant 0 : index
    %c0_2 = arith.constant 0 : index
    %1 = vector.load %arg2[%c0_1, %c0_2] : memref<128x32xbf16, #tpu.memory_space<vmem>>, vector<128x32xbf16>
    %cst = arith.constant dense<0.000000e+00> : vector<128x8xf32>
    %2 = tpu.matmul %1, %0, %cst {dimension_numbers = #tpu.dot_dimension_numbers<[1], [0], [0], [1], [0, 0, 1, 1], [], []>} : vector<128x32xbf16>, vector<32x8xbf16>, vector<128x8xf32> -> vector<128x8xf32>
    %c0_3 = arith.constant 0 : index
    %c0_4 = arith.constant 0 : index
    %3 = vector.load %arg3[%c0_3, %c0_4] : memref<128x1xf32, #tpu.memory_space<vmem>>, vector<128x1xf32>
    %4 = vector.broadcast %3 : vector<128x1xf32> to vector<128x8xf32>
    %5 = arith.addf %2, %4 : vector<128x8xf32>
    %cst_5 = arith.constant 1.000000e-01 : f32
    %6 = vector.broadcast %cst_5 : f32 to vector<128x8xf32>
    %7 = arith.mulf %6, %5 : vector<128x8xf32>
    %8 = arith.maximumf %5, %7 : vector<128x8xf32>
    %c0_6 = arith.constant 0 : index
    %c0_7 = arith.constant 0 : index
    %9 = vector.load %arg4[%c0_6, %c0_7] : memref<64x128xbf16, #tpu.memory_space<vmem>>, vector<64x128xbf16>
    %10 = arith.truncf %8 : vector<128x8xf32> to vector<128x8xbf16>
    %cst_8 = arith.constant dense<0.000000e+00> : vector<64x8xf32>
    %11 = tpu.matmul %9, %10, %cst_8 {dimension_numbers = #tpu.dot_dimension_numbers<[1], [0], [0], [1], [0, 0, 1, 1], [], []>} : vector<64x128xbf16>, vector<128x8xbf16>, vector<64x8xf32> -> vector<64x8xf32>
    %c0_9 = arith.constant 0 : index
    %c0_10 = arith.constant 0 : index
    %12 = vector.load %arg5[%c0_9, %c0_10] : memref<64x1xf32, #tpu.memory_space<vmem>>, vector<64x1xf32>
    %13 = vector.broadcast %12 : vector<64x1xf32> to vector<64x8xf32>
    %14 = arith.addf %11, %13 : vector<64x8xf32>
    %cst_11 = arith.constant 1.000000e-01 : f32
    %15 = vector.broadcast %cst_11 : f32 to vector<64x8xf32>
    %16 = arith.mulf %15, %14 : vector<64x8xf32>
    %17 = arith.maximumf %14, %16 : vector<64x8xf32>
    %c0_12 = arith.constant 0 : index
    %c0_13 = arith.constant 0 : index
    %18 = vector.load %arg6[%c0_12, %c0_13] : memref<5x64xbf16, #tpu.memory_space<vmem>>, vector<5x64xbf16>
    %19 = arith.truncf %17 : vector<64x8xf32> to vector<64x8xbf16>
    %cst_14 = arith.constant dense<0.000000e+00> : vector<5x8xf32>
    %20 = tpu.matmul %18, %19, %cst_14 {dimension_numbers = #tpu.dot_dimension_numbers<[1], [0], [0], [1], [0, 0, 1, 1], [], []>} : vector<5x64xbf16>, vector<64x8xbf16>, vector<5x8xf32> -> vector<5x8xf32>
    %c0_15 = arith.constant 0 : index
    %c0_16 = arith.constant 0 : index
    %21 = vector.load %arg7[%c0_15, %c0_16] : memref<5x1xf32, #tpu.memory_space<vmem>>, vector<5x1xf32>
    %22 = vector.broadcast %21 : vector<5x1xf32> to vector<5x8xf32>
    %23 = arith.addf %20, %22 : vector<5x8xf32>
    %24 = arith.mulf %23, %23 : vector<5x8xf32>
    %cst_17 = arith.constant dense<0.000000e+00> : vector<8xf32>
    %25 = vector.multi_reduction <add>, %24, %cst_17 [0] : vector<5x8xf32> to vector<8xf32>
    %26 = vector.shape_cast %25 : vector<8xf32> to vector<1x8xf32>
    %27 = math.rsqrt %26 : vector<1x8xf32>
    %28 = vector.broadcast %27 : vector<1x8xf32> to vector<5x8xf32>
    %29 = arith.mulf %23, %28 : vector<5x8xf32>
    %c0_18 = arith.constant 0 : index
    %c0_19 = arith.constant 0 : index
    %30 = vector.load %arg8[%c0_18, %c0_19] : memref<5x8xf32, #tpu.memory_space<vmem>>, vector<5x8xf32>
    tpu.vector_store %arg8[%c0_18, %c0_19], %29 {strides = array<i32>} : memref<5x8xf32, #tpu.memory_space<vmem>>, vector<5x8xf32>,
    return
  }
  func.func @transform_0(%arg0: i32) -> (i32, i32) {
    %c0_i32 = arith.constant 0 : i32
    %c0_i32_0 = arith.constant 0 : i32
    return %c0_i32, %arg0 : i32, i32
  }
  func.func @transform_1(%arg0: i32) -> (i32, i32) {
    %c0_i32 = arith.constant 0 : i32
    %c0_i32_0 = arith.constant 0 : i32
    %c0_i32_1 = arith.constant 0 : i32
    return %c0_i32, %c0_i32_0 : i32, i32
  }
  func.func @transform_2(%arg0: i32) -> (i32, i32) {
    %c0_i32 = arith.constant 0 : i32
    %c0_i32_0 = arith.constant 0 : i32
    %c0_i32_1 = arith.constant 0 : i32
    return %c0_i32, %c0_i32_0 : i32, i32
  }
  func.func @transform_3(%arg0: i32) -> (i32, i32) {
    %c0_i32 = arith.constant 0 : i32
    %c0_i32_0 = arith.constant 0 : i32
    %c0_i32_1 = arith.constant 0 : i32
    return %c0_i32, %c0_i32_0 : i32, i32
  }
  func.func @transform_4(%arg0: i32) -> (i32, i32) {
    %c0_i32 = arith.constant 0 : i32
    %c0_i32_0 = arith.constant 0 : i32
    %c0_i32_1 = arith.constant 0 : i32
    return %c0_i32, %c0_i32_0 : i32, i32
  }
  func.func @transform_5(%arg0: i32) -> (i32, i32) {
    %c0_i32 = arith.constant 0 : i32
    %c0_i32_0 = arith.constant 0 : i32
    %c0_i32_1 = arith.constant 0 : i32
    return %c0_i32, %c0_i32_0 : i32, i32
  }
  func.func @transform_6(%arg0: i32) -> (i32, i32) {
    %c0_i32 = arith.constant 0 : i32
    %c0_i32_0 = arith.constant 0 : i32
    %c0_i32_1 = arith.constant 0 : i32
    return %c0_i32, %c0_i32_0 : i32, i32
  }
  func.func @transform_7(%arg0: i32) -> (i32, i32) {
    %c0_i32 = arith.constant 0 : i32
    %c0_i32_0 = arith.constant 0 : i32
    return %c0_i32, %arg0 : i32, i32
  }
}

</mosaic_0001>

<bundles_post_ra>
// kernel: tpu_custom_call.1
= control target key start
LH: loop header
LB: loop body
LE: loop exit
PB: predicated region body
PF: predicated region fallthrough
CT: control target
= control target key end

     0   :  { %vm196_vm0 = vcmask 261120   ;;  %v752_v3 = vmov 0   ;;  %s938_s0 = inlined_call_operand.vmem [shape: bf16[32,8], index: 0, kind: input, shape index: {}]   ;;  %s939_s1 = inlined_call_operand.vmem [shape: bf16[128,32], index: 1, kind: input, shape index: {}]   ;;  %s940_s2 = inlined_call_operand.vmem [shape: f32[128,1], index: 2, kind: input, shape index: {}]   ;;  %s941_s3 = inlined_call_operand.vmem [shape: bf16[64,128], index: 3, kind: input, shape index: {}]   ;;  %s942_s4 = inlined_call_operand.vmem [shape: f32[64,1], index: 4, kind: input, shape index: {}]   ;;  %s943_s5 = inlined_call_operand.vmem [shape: bf16[5,64], index: 5, kind: input, shape index: {}]   ;;  %s944_s6 = inlined_call_operand.vmem [shape: f32[5,1], index: 6, kind: input, shape index: {}]   ;;  %s945_s7 = inlined_call_operand.hbm [shape: f32[5,8], index: 7, kind: output, shape index: {}]  }
   0x1   :  { %v712_v0 = vld [vmem:[%s938_s0] sm:$0xff]   ;;  %v713_v1 = vld [vmem:[%s938_s0 + $0x8] sm:$0xff]   ;;  %710 = vset.pattern.permute.xlu0 %v752_v3  ;;  %711 = vset.pattern.permute.xlu1 %v752_v3  ;;  %v716_v5 = vld [vmem:[%s939_s1 + $0x10] sm:$0xff]  }
   0x2   :  { %650 = vmatprep.subr.bf16.mxu0 %v712_v0  ;;  %v714_v2 = vld [vmem:[%s939_s1] sm:$0xff]   ;;  %v715_v4 = vld [vmem:[%s939_s1 + $0x8] sm:$0xff]   ;;  %v50_v7 = vld [vmem:[%s940_s2 + $0x10] sm:$0xff] }
   0x3   :  { %651 = vmatpush3.bf16.msra.mxu0 %v712_v0  ;;  %654 = vmatprep.mubr.msk.bf16.mxu0 %vm196_vm0, %v714_v2  ;;  %v48_v6 = vld [vmem:[%s940_s2] sm:$0xff]  ;;  %v49_v8 = vld [vmem:[%s940_s2 + $0x8] sm:$0xff]  ;;  %v51_v9 = vld [vmem:[%s940_s2 + $0x18] sm:$0xff] }
   0x4   :  { %652 = vmatprep.subr.bf16.mxu0 %v713_v1  ;;  %66 = vperm.xlu0 %710, %v48_v6   ;;  %v717_v10 = vld [vmem:[%s939_s1 + $0x18] sm:$0xff]   ;;  %v718_v11 = vld [vmem:[%s939_s1 + $0x20] sm:$0xff]   ;;  %v53_v13 = vld [vmem:[%s940_s2 + $0x28] sm:$0xff] }
   0x5   :  { %76 = vperm.xlu1 %711, %v50_v7   ;;  %v52_v12 = vld [vmem:[%s940_s2 + $0x20] sm:$0xff]  ;;  %v54_v14 = vld [vmem:[%s940_s2 + $0x30] sm:$0xff]  ;;  %v55_v15 = vld [vmem:[%s940_s2 + $0x38] sm:$0xff] }
   0x7   :  { %653 = vmatpush3.bf16.msra.mxu0 %v713_v1 }
   0x8   :  { %71 = vperm.xlu0 %710, %v49_v8  }
   0x9   :  { %81 = vperm.xlu1 %711, %v51_v9  }
   0xa   :  { %655 = vmatmul.mubr.msk.bf16.vlgmr.msra.gmra.mrb[0].mxu0 %vm196_vm0, %v715_v4 }
   0xb   :  { %658 = vmatprep.mubr.msk.bf16.mxu0 %vm196_vm0, %v716_v5 }
   0xc   :  { %86 = vperm.xlu0 %710, %v52_v12  }
   0xd   :  { %91 = vperm.xlu1 %711, %v53_v13  }
  0x12   :  { %659 = vmatmul.mubr.msk.bf16.gmra.mrb[4].mxu0 %vm196_vm0, %v717_v10 }
  0x13   :  { %662 = vmatprep.mubr.msk.bf16.mxu0 %vm196_vm0, %v718_v11 }
  0x14   :  { %12 = vsyncpa [#allocation3], 0  ;;  %v719_v16 = vld [vmem:[%s939_s1 + $0x28] sm:$0xff]   ;;  %v720_v17 = vld [vmem:[%s939_s1 + $0x30] sm:$0xff]   ;;  %96 = vperm.xlu0 %710, %v54_v14   ;;  %101 = vperm.xlu1 %711, %v55_v15   ;;  %vm754_vm1 = vmmov 0   ;;  %vm530_vm2 = vcmask 523264  }
  0x15   :  { %v56_v18 = vld [vmem:[%s940_s2 + $0x40] sm:$0xff]  ;;  %v57_v19 = vld [vmem:[%s940_s2 + $0x48] sm:$0xff]  ;;  %v58_v20 = vld [vmem:[%s940_s2 + $0x50] sm:$0xff]  ;;  %vm575_vm3 = vcmask 61440  }
  0x16   :  { %v59_v21 = vld [vmem:[%s940_s2 + $0x58] sm:$0xff]  ;;  %v60_v23 = vld [vmem:[%s940_s2 + $0x60] sm:$0xff]  ;;  %v61_v24 = vld [vmem:[%s940_s2 + $0x68] sm:$0xff] }
  0x17   :  { %v721_v22 = vld [vmem:[%s939_s1 + $0x38] sm:$0xff]   ;;  %v62_v25 = vld [vmem:[%s940_s2 + $0x70] sm:$0xff]  ;;  %v366_v27 = vld [vmem:[%s942_s4] sm:$0xff] }
  0x18   :  { %106 = vperm.xlu0 %710, %v56_v18   ;;  %111 = vperm.xlu1 %711, %v57_v19   ;;  %v63_v26 = vld [vmem:[%s940_s2 + $0x78] sm:$0xff]  ;;  %v367_v28 = vld [vmem:[%s942_s4 + $0x8] sm:$0xff]  ;;  %v368_v29 = vld [vmem:[%s942_s4 + $0x10] sm:$0xff] }
  0x19   :  { %v369_v30 = vld [vmem:[%s942_s4 + $0x18] sm:$0xff]  ;;  %v370_v31 = vld [vmem:[%s942_s4 + $0x20] sm:$0xff]  ;;  %v371_v32 = vld [vmem:[%s942_s4 + $0x28] sm:$0xff] }
  0x1a   :  { %663 = vmatmul.mubr.msk.bf16.gmra.mrb[8].mxu0 %vm196_vm0, %v719_v16  ;;  %v372_v33 = vld [vmem:[%s942_s4 + $0x30] sm:$0xff]  ;;  %v373_v34 = vld [vmem:[%s942_s4 + $0x38] sm:$0xff]  ;;  %v524_v35 = vld [vmem:[%s944_s6] sm:$0x1f] }
  0x1b   :  { %666 = vmatprep.mubr.msk.bf16.mxu0 %vm196_vm0, %v720_v17  ;;  %v722_v36 = vld [vmem:[%s941_s3] sm:$0xff]  }
  0x1c   :  { %116 = vperm.xlu0 %710, %v58_v20   ;;  %121 = vperm.xlu1 %711, %v59_v21  }
  0x1d   :  { %686 = vmatprep.mubr.bf16.mxu1 %v722_v36 }
  0x20   :  { %126 = vperm.xlu0 %710, %v60_v23   ;;  %131 = vperm.xlu1 %711, %v61_v24  }
  0x22   :  { %667 = vmatmul.mubr.msk.bf16.gmra.mrb[12].mxu0 %vm196_vm0, %v721_v22 }
  0x24   :  { %136 = vperm.xlu0 %710, %v62_v25   ;;  %141 = vperm.xlu1 %711, %v63_v26  }
  0x28   :  { %376 = vperm.xlu0 %710, %v366_v27   ;;  %381 = vperm.xlu1 %711, %v367_v28  }
  0x2c   :  { %386 = vperm.xlu0 %710, %v368_v29   ;;  %391 = vperm.xlu1 %711, %v369_v30  }
  0x30   :  { %396 = vperm.xlu0 %710, %v370_v31   ;;  %401 = vperm.xlu1 %711, %v371_v32  }
  0x34   :  { %406 = vperm.xlu0 %710, %v372_v33   ;;  %411 = vperm.xlu1 %711, %v373_v34  }
  0x38   :  { %527 = vperm.xlu0 %710, %v524_v35  }
  0x83   :  { %v67_v37 = vpop.permute.xlu0 %66 }
  0x84   :  { %v77_v38 = vpop.permute.xlu1 %76 }
  0x87   :  { %v72_v39 = vpop.permute.xlu0 %71 }
  0x88   :  { %v82_v40 = vpop.permute.xlu1 %81 }
  0x8b   :  { %v87_v41 = vpop.permute.xlu0 %86 }
  0x8c   :  { %v92_v42 = vpop.permute.xlu1 %91 }
  0x93   :  { %v97_v43 = vpop.permute.xlu0 %96  ;;  %v102_v47 = vpop.permute.xlu1 %101 }
  0x97   :  { %v107_v56 = vpop.permute.xlu0 %106  ;;  %v112_v60 = vpop.permute.xlu1 %111 }
  0x9b   :  { %v117_v9 = vpop.permute.xlu0 %116  ;;  %v122_v13 = vpop.permute.xlu1 %121 }
  0x9f   :  { %v127_v23 = vpop.permute.xlu0 %126  ;;  %v132_v30 = vpop.permute.xlu1 %131 }
  0xdd   :  { %v656_v44 = vpop.f32.mrb[0].mxu0 }
  0xde   :  { %v264_v45 = vadd.f32 %v656_v44, %v77_v38  ;;  %v255_v46 = vpop.f32.mrb[1].mxu0  ;;  %v142_v44 = vpop.permute.xlu1 %141 }
  0xdf   :  { %v256_v48 = vadd.f32 %v255_v46, %v67_v37  ;;  %v657_v49 = vpop.f32.mrb[2].mxu0  ;;  %v137_v37 = vpop.permute.xlu0 %136 }
  0xe0   :  { %v320_v50 = vmul.f32 0.1, %v264_v45  ;;  %v267_v51 = vadd.f32 %v657_v49, %v82_v40  ;;  %v258_v52 = vpop.f32.mrb[3].mxu0 }
  0xe1   :  { %v318_v53 = vmul.f32 0.1, %v256_v48  ;;  %v259_v54 = vadd.f32 %v258_v52, %v72_v39 }
  0xe2   :  { %v321_v55 = vmul.f32 0.1, %v267_v51  ;;  %v336_v58 = vmax.f32 %v264_v45, %v320_v50 }
  0xe3   :  { %v319_v57 = vmul.f32 0.1, %v259_v54  ;;  %v334_v61 = vmax.f32 %v256_v48, %v318_v53 }
  0xe4   :  { %v337_v59 = vmax.f32 %v267_v51, %v321_v55 }
  0xe5   :  { %v335_v62 = vmax.f32 %v259_v54, %v319_v57  ;;  %v660_v63 = vpop.f32.mrb[4].mxu0 }
  0xe6   :  { %v280_v0 = vadd.f32 %v660_v63, %v97_v43  ;;  %v271_v1 = vpop.f32.mrb[5].mxu0  ;;  %v359_v2 = vpack.c.bf16 %v337_v59, %v336_v58  ;;  %v725_v63 = vld [vmem:[%s941_s3 + $0x18] sm:$0xff]  }
  0xe7   :  { %v272_v3 = vadd.f32 %v271_v1, %v87_v41  ;;  %v661_v4 = vpop.f32.mrb[6].mxu0  ;;  %v358_v5 = vpack.c.bf16 %v335_v62, %v334_v61  ;;  %v723_v61 = vld [vmem:[%s941_s3 + $0x8] sm:$0xff]   ;;  %v724_v62 = vld [vmem:[%s941_s3 + $0x10] sm:$0xff]   ;;  %v377_v1 = vpop.permute.xlu0 %376 }
  0xe8   :  { %v324_v6 = vmul.f32 0.1, %v280_v0  ;;  %v283_v7 = vadd.f32 %v661_v4, %v102_v47  ;;  %v274_v8 = vpop.f32.mrb[7].mxu0 }
  0xe9   :  { %v322_v10 = vmul.f32 0.1, %v272_v3  ;;  %v275_v11 = vadd.f32 %v274_v8, %v92_v42  ;;  %670 = vmatprep.subr.bf16.mxu1 %v358_v5 }
  0xea   :  { %v325_v12 = vmul.f32 0.1, %v283_v7  ;;  %671 = vmatpush3.bf16.msra.mxu1 %v358_v5  ;;  %v340_v15 = vmax.f32 %v280_v0, %v324_v6  ;;  %v753_v0 = vmov 0.0  }
  0xeb   :  { %v323_v14 = vmul.f32 0.1, %v275_v11  ;;  %672 = vmatprep.subr.bf16.mxu1 %v359_v2  ;;  %v338_v17 = vmax.f32 %v272_v3, %v322_v10  ;;  %694 = vmatprep.subr.bf16.mxu0 %v753_v0  ;;  %v387_v3 = vpop.permute.xlu0 %386 }
  0xec   :  { %v341_v16 = vmax.f32 %v283_v7, %v325_v12  ;;  %702 = vmatprep.mubr.msk.bf16.mxu0 %vm754_vm1, %v753_v0 }
  0xed   :  { %v339_v18 = vmax.f32 %v275_v11, %v323_v14  ;;  %v664_v19 = vpop.f32.mrb[8].mxu0 }
  0xee   :  { %v296_v20 = vadd.f32 %v664_v19, %v117_v9  ;;  %v287_v21 = vpop.f32.mrb[9].mxu0  ;;  %673 = vmatpush3.bf16.msra.mxu1 %v359_v2  ;;  %v361_v22 = vpack.c.bf16 %v341_v16, %v340_v15  ;;  %v382_v2 = vpop.permute.xlu1 %381 }
  0xef   :  { %v288_v24 = vadd.f32 %v287_v21, %v107_v56  ;;  %v665_v25 = vpop.f32.mrb[10].mxu0  ;;  %v360_v26 = vpack.c.bf16 %v339_v18, %v338_v17  ;;  %v397_v8 = vpop.permute.xlu0 %396 }
  0xf0   :  { %v328_v27 = vmul.f32 0.1, %v296_v20  ;;  %v299_v28 = vadd.f32 %v665_v25, %v122_v13  ;;  %v290_v29 = vpop.f32.mrb[11].mxu0 }
  0xf1   :  { %v326_v31 = vmul.f32 0.1, %v288_v24  ;;  %v291_v32 = vadd.f32 %v290_v29, %v112_v60  ;;  %674 = vmatprep.subr.bf16.mxu1 %v360_v26 }
  0xf2   :  { %v329_v33 = vmul.f32 0.1, %v299_v28  ;;  %675 = vmatpush3.bf16.msra.mxu1 %v360_v26  ;;  %v344_v35 = vmax.f32 %v296_v20, %v328_v27  ;;  %v392_v4 = vpop.permute.xlu1 %391 }
  0xf3   :  { %v327_v34 = vmul.f32 0.1, %v291_v32  ;;  %676 = vmatprep.subr.bf16.mxu1 %v361_v22  ;;  %v342_v38 = vmax.f32 %v288_v24, %v326_v31  ;;  %v407_v21 = vpop.permute.xlu0 %406 }
  0xf4   :  { %v345_v36 = vmax.f32 %v299_v28, %v329_v33 }
  0xf5   :  { %v343_v39 = vmax.f32 %v291_v32, %v327_v34  ;;  %v668_v40 = vpop.f32.mrb[12].mxu0 }
  0xf6   :  { %v312_v41 = vadd.f32 %v668_v40, %v137_v37  ;;  %v303_v42 = vpop.f32.mrb[13].mxu0  ;;  %677 = vmatpush3.bf16.msra.mxu1 %v361_v22  ;;  %v363_v43 = vpack.c.bf16 %v345_v36, %v344_v35  ;;  %v402_v14 = vpop.permute.xlu1 %401 }
  0xf7   :  { %v304_v45 = vadd.f32 %v303_v42, %v127_v23  ;;  %v669_v46 = vpop.f32.mrb[14].mxu0  ;;  %v362_v47 = vpack.c.bf16 %v343_v39, %v342_v38 }
  0xf8   :  { %v332_v48 = vmul.f32 0.1, %v312_v41  ;;  %v315_v49 = vadd.f32 %v669_v46, %v142_v44  ;;  %v306_v50 = vpop.f32.mrb[15].mxu0  ;;  %v528_v46 = vpop.permute.xlu0 %527 }
  0xf9   :  { %v330_v51 = vmul.f32 0.1, %v304_v45  ;;  %v307_v52 = vadd.f32 %v306_v50, %v132_v30  ;;  %678 = vmatprep.subr.bf16.mxu1 %v362_v47 }
  0xfa   :  { %v333_v53 = vmul.f32 0.1, %v315_v49  ;;  %679 = vmatpush3.bf16.msra.mxu1 %v362_v47  ;;  %v348_v55 = vmax.f32 %v312_v41, %v332_v48  ;;  %v412_v28 = vpop.permute.xlu1 %411 }
  0xfb   :  { %v331_v54 = vmul.f32 0.1, %v307_v52  ;;  %680 = vmatprep.subr.bf16.mxu1 %v363_v43  ;;  %v346_v57 = vmax.f32 %v304_v45, %v330_v51  ;;  %v519_v45 = vld [vmem:[%s943_s5] sm:$0x7]  ;;  %s755_s5 = smov [#allocation2]  }
  0xfc   :  { %v349_v56 = vmax.f32 %v315_v49, %v333_v53  ;;  %s592_s1 = sshll.u32 %s755_s5, 4  ;;  %s593_s1 = int_to_ptr.vmem [resolvable:$true] %s592_s1 }
  0xfd   :  { %v347_v58 = vmax.f32 %v307_v52, %v331_v54  ;;  %s728_s27 = scalar_lea.vmem %s593_s1, 128  ;;  %p733_p1 = scmp.lt.s32.totalorder %s593_s1, %s593_s1 }
  0xfe   :  { %681 = vmatpush3.bf16.msra.mxu1 %v363_v43  ;;  %v365_v59 = vpack.c.bf16 %v349_v56, %v348_v55  ;;  %p729_p0 = scmp.ne.s32.totalorder %s593_s1, %s728_s27  ;;  %p734_p2 = scmp.lt.s32.totalorder %s728_s27, %s728_s27 }
  0xff   :  { %v364_v60 = vpack.c.bf16 %v347_v58, %v346_v57 }
 0x100   :  { %p735_p3 = por %p734_p2, %p733_p1 }
 0x101   :  { %682 = vmatprep.subr.bf16.mxu1 %v364_v60 }
 0x102   :  { %683 = vmatpush3.bf16.msra.mxu1 %v364_v60  ;;  %p736_p4 = pnand %p735_p3, %p729_p0 }
 0x103   :  { %684 = vmatprep.subr.bf16.mxu1 %v365_v59 }
 0x106   :  { %685 = vmatpush3.bf16.msra.mxu1 %v365_v59 }
 0x109   :  { %687 = vmatmul.mubr.bf16.vlgmr.msra.gmra.mrb[0].mxu1 %v723_v61 }
 0x10a   :  { %690 = vmatprep.mubr.bf16.mxu1 %v724_v62 }
 0x111   :  { %691 = vmatmul.mubr.bf16.gmra.mrb[4].mxu1 %v725_v63 }
 0x1dc   :  { %v688_v5 = vpop.f32.mrb[0].mxu1 }
 0x1dd   :  { %v481_v6 = vadd.f32 %v688_v5, %v387_v3  ;;  %v472_v7 = vpop.f32.mrb[1].mxu1 }
 0x1de   :  { %v473_v9 = vadd.f32 %v472_v7, %v377_v1  ;;  %v689_v10 = vpop.f32.mrb[2].mxu1 }
 0x1df   :  { %v505_v11 = vmul.f32 0.1, %v481_v6  ;;  %v484_v12 = vadd.f32 %v689_v10, %v392_v4  ;;  %v475_v13 = vpop.f32.mrb[3].mxu1 }
 0x1e0   :  { %v503_v15 = vmul.f32 0.1, %v473_v9  ;;  %v476_v16 = vadd.f32 %v475_v13, %v382_v2 }
 0x1e1   :  { %v506_v17 = vmul.f32 0.1, %v484_v12  ;;  %v513_v19 = vmax.f32 %v481_v6, %v505_v11 }
 0x1e2   :  { %v504_v18 = vmul.f32 0.1, %v476_v16  ;;  %v511_v22 = vmax.f32 %v473_v9, %v503_v15 }
 0x1e3   :  { %v514_v20 = vmax.f32 %v484_v12, %v506_v17 }
 0x1e4   :  { %v512_v23 = vmax.f32 %v476_v16, %v504_v18  ;;  %v692_v24 = vpop.f32.mrb[4].mxu1 }
 0x1e5   :  { %v521_v25 = vpack.c.bf16 %v514_v20, %v513_v19  ;;  %v497_v26 = vadd.f32 %v692_v24, %v407_v21  ;;  %v488_v27 = vpop.f32.mrb[5].mxu1 }
 0x1e6   :  { %v520_v29 = vpack.c.bf16 %v512_v23, %v511_v22  ;;  %v489_v30 = vadd.f32 %v488_v27, %v397_v8  ;;  %v693_v31 = vpop.f32.mrb[6].mxu1 }
 0x1e7   :  { %v509_v32 = vmul.f32 0.1, %v497_v26  ;;  %v500_v33 = vadd.f32 %v693_v31, %v412_v28  ;;  %v491_v34 = vpop.f32.mrb[7].mxu1 }
 0x1e8   :  { %v507_v35 = vmul.f32 0.1, %v489_v30  ;;  %v492_v36 = vadd.f32 %v491_v34, %v402_v14  ;;  %695 = vmatpush3.bf16.msra.mxu0 %v520_v29 }
 0x1e9   :  { %v510_v37 = vmul.f32 0.1, %v500_v33  ;;  %696 = vmatprep.subr.bf16.mxu0 %v753_v0  ;;  %v517_v39 = vmax.f32 %v497_v26, %v509_v32 }
 0x1ea   :  { %v508_v38 = vmul.f32 0.1, %v492_v36  ;;  %v515_v41 = vmax.f32 %v489_v30, %v507_v35 }
 0x1eb   :  { %v518_v40 = vmax.f32 %v500_v33, %v510_v37 }
 0x1ec   :  { %v516_v42 = vmax.f32 %v492_v36, %v508_v38  ;;  %697 = vmatpush3.bf16.msra.mxu0 %v521_v25 }
 0x1ed   :  { %v523_v43 = vpack.c.bf16 %v518_v40, %v517_v39  ;;  %698 = vmatprep.subr.bf16.mxu0 %v753_v0 }
 0x1ee   :  { %v522_v44 = vpack.c.bf16 %v516_v42, %v515_v41 }
 0x1f0   :  { %699 = vmatpush3.bf16.msra.mxu0 %v522_v44 }
 0x1f1   :  { %700 = vmatprep.subr.bf16.mxu0 %v753_v0 }
 0x1f4   :  { %701 = vmatpush3.bf16.msra.mxu0 %v523_v43 }
 0x1f7   :  { %703 = vmatmul.mubr.msk.bf16.vlgmr.msra.gmra.mrb[16].mxu0 %vm530_vm2, %v519_v45 }
 0x2ca   :  { %v568_v47 = vpop.f32.mrb[16].mxu0 }
 0x2cb   :  { %v569_v48 = vadd.f32 %v568_v47, %v528_v46  ;;  %v704_v49 = vpop.f32.mrb[17].mxu0 }
 0x2cc   :  { %v571_v50 = vpop.f32.mrb[18].mxu0 }
 0x2cd   :  { %v574_v51 = vmul.f32 %v569_v48, %v569_v48  ;;  %v705_v52 = vpop.f32.mrb[19].mxu0 }
 0x2cf   :  { %v576_v53 = vsel %vm575_vm3, %v574_v51, 0.0 }
 0x2d0   :  { %v577_v54 = vrot.slane %v576_v53, 4 }
 0x2d2   :  { %v578_v55 = vadd.f32 %v577_v54, %v576_v53 }
 0x2d4   :  { %v579_v56 = vrot.slane %v578_v55, 2 }
 0x2d6   :  { %v580_v57 = vadd.f32 %v579_v56, %v578_v55 }
 0x2d8   :  { %v581_v58 = vrot.slane %v580_v57, 1 }
 0x2da   :  { %v582_v59 = vadd.f32 %v581_v58, %v580_v57 }
 0x2dc   :  { %726 = vrsqrt.f32 %v582_v59 }
 0x2e6   :  { %v727_v60 = vpop.eup %726 }
 0x2e7   :  { %v584_v61 = vmul.f32 %v727_v60, %v569_v48 }
 0x2e9   :  { %585 = vst.msk [vmem:[#allocation2] sm:$0x1f] %vm575_vm3, %v584_v61 }
 0x2ea   :  { %739 = shalt.err (!%p736_p4)
}
 0x2eb   :  { %s740_s30 = scalar_lea.hbm %s945_s7, 128 }
 0x2ec   :  { %p741_p5 = scmp.ne.s32.totalorder %s945_s7, %s740_s30  ;;  %p744_p6 = scmp.lt.u32.totalorder %s740_s30, %s945_s7 }
 0x2ee   :  { %p746_p7 = pnand %p744_p6, %p741_p5 }
 0x2f0   :  { %749 = shalt.err (!%p746_p7)
}
 0x2f1   :  { %595 = dma.vmem_to_hbm [thread:$0]  %s593_s1, 128, %s945_s7, [#allocation3]  }
 0x2f2   :  { %750 = dma.done.wait [#allocation3], 128  }
 0x2f3   :  { %751 = vsyncadd [#allocation3], 4294967168 }
 0x2f4   :  { %599 = vsyncpa [#allocation3], 1 }

</bundles_post_ra>
